<compile_context>
chip_gen: v7x
topology: tpu7x:2x2x1
jax: 0.10.0
libtpu: 0.0.40
codegen_flags: <defaults>
</compile_context>

<pallas_src>
import functools

import numpy as np
import jax
import jax.numpy as jnp
from jax.experimental import pallas as pl
from jax.experimental.pallas import tpu as pltpu


def _round_up(x, m):
    return (x + m - 1) // m * m


def _pick_tile(n, max_tile=256):
    """(tile, padded_n).  Small channel counts -> one full-dim block (allowed by
    the (8,128) rule, no padding waste); large ones -> 128-aligned 256-wide
    tiles (v6e/v7x MXU-sized, modest double-buffered VMEM footprint)."""
    n8 = _round_up(n, 8)
    if n8 <= max_tile:
        return n8, n8
    return max_tile, _round_up(n, max_tile)


# ----------------------------------------------------------------------------
# Pallas kernel: fused conv + folded-BN + SiLU
# ----------------------------------------------------------------------------
def _conv_bn_silu_kernel(x_ref, w_ref, s_ref, b_ref, o_ref, acc_ref, *,
                         stride, apply_silu):
    """One grid step = (batch n, output row oh, cout tile j, tap row dh, cin tile kc).

    x_ref  : (1, 1, Wp, TK)  bf16  padded input row  oh*stride + dh
    w_ref  : (1, KW, TK, TN) bf16  weight taps for row dh / cin tile kc / cout tile j
    s_ref  : (1, TN) f32  folded BN scale      b_ref : (1, TN) f32  folded BN bias
    o_ref  : (1, 1, Wo, TN) f32  output row oh
    acc_ref: (Wo, TN) f32 VMEM accumulator, carried over the (dh, kc) reduction.
    """
    dh = pl.program_id(3)
    kc = pl.program_id(4)

    @pl.when((dh == 0) & (kc == 0))
    def _init():
        acc_ref[...] = jnp.zeros_like(acc_ref)

    kw = w_ref.shape[1]
    wo = o_ref.shape[2]
    x_row = x_ref[0, 0, :, :]                      # (Wp, TK) bf16, resident in VMEM
    for dw in range(kw):                           # static unroll over width taps
        if stride == 1:
            xs = x_row[dw:dw + wo, :]
        else:
            # strided width taps (only traced when stride > 1)
            xs = x_row[dw:dw + stride * (wo - 1) + 1:stride, :]
        acc_ref[...] += jnp.dot(xs, w_ref[0, dw, :, :],
                                preferred_element_type=jnp.float32)

    @pl.when((dh == pl.num_programs(3) - 1) & (kc == pl.num_programs(4) - 1))
    def _finalize():
        y = acc_ref[...] * s_ref[...] + b_ref[...]          # f32 BN epilogue
        if apply_silu:
            # SiLU(y) = y * sigmoid(y); exp and approx reciprocal both use the EUP slot.
            y = y * pl.reciprocal(1.0 + jnp.exp(-y), approx=True)
        o_ref[0, 0, :, :] = y.astype(o_ref.dtype)


# ----------------------------------------------------------------------------
# Wrapper: NCHW in/out, one pad, pallas_call with a 5-D grid
# ----------------------------------------------------------------------------
@functools.partial(jax.jit,
                   static_argnames=("stride", "padding", "cout", "tn", "tk",
                                    "apply_silu"))
def conv_bn_silu(x_nchw, w, scale, bias, *, stride, padding, cout, tn, tk,
                 apply_silu=True):
    """Fused Conv2d(bias=False) + BatchNorm2d(eval, folded) + SiLU.

    x_nchw : (N, Cin, H, W) f32
    w      : (KH, KW, Cin_p, Cout_p) bf16 (pre-padded / pre-cast at init)
    scale, bias : (1, Cout_p) f32 folded BN parameters
    Returns (N, Cout, Ho, Wo) f32.
    """
    n, cin, h, wdt = x_nchw.shape
    kh, kw, cin_p, cout_p = w.shape
    assert cin <= cin_p and cout <= cout_p
    assert cout_p % tn == 0 and cin_p % tk == 0

    # NCHW -> NHWC, a single spatial+channel zero-pad, bf16 for the MXU.
    x = jnp.transpose(x_nchw, (0, 2, 3, 1))
    x = jnp.pad(x, ((0, 0), (padding, padding), (padding, padding),
                    (0, cin_p - cin))).astype(jnp.bfloat16)
    hp, wp = x.shape[1], x.shape[2]
    ho = (hp - kh) // stride + 1
    wo = (wp - kw) // stride + 1

    nj = cout_p // tn
    nk = cin_p // tk
    grid = (n, ho, nj, kh, nk)            # reduction axes (tap row, cin tile) last

    flops = 2 * n * ho * wo * cout_p * kh * kw * cin_p
    cost = pl.CostEstimate(
        flops=flops,
        transcendentals=n * ho * wo * cout_p if apply_silu else 0,
        bytes_accessed=int(x.size * 2 * kh + w.size * 2 * n * ho
                           + n * ho * wo * cout_p * 4))

    out = pl.pallas_call(
        functools.partial(_conv_bn_silu_kernel, stride=stride,
                          apply_silu=apply_silu),
        out_shape=jax.ShapeDtypeStruct((n, ho, wo, cout_p), jnp.float32),
        grid_spec=pltpu.PrefetchScalarGridSpec(
            num_scalar_prefetch=0,
            grid=grid,
            in_specs=[
                # padded input row oh*stride + dh, cin tile kc (H block size 1
                # => the block index IS the padded row index; no HBM im2col).
                pl.BlockSpec((1, 1, wp, tk),
                             lambda ni, oi, ji, di, ki: (ni, oi * stride + di, 0, ki)),
                # weight taps for row dh, cin tile kc, cout tile j
                pl.BlockSpec((1, kw, tk, tn),
                             lambda ni, oi, ji, di, ki: (di, 0, ki, ji)),
                pl.BlockSpec((1, tn), lambda ni, oi, ji, di, ki: (0, ji)),
                pl.BlockSpec((1, tn), lambda ni, oi, ji, di, ki: (0, ji)),
            ],
            out_specs=pl.BlockSpec((1, 1, wo, tn),
                                   lambda ni, oi, ji, di, ki: (ni, oi, 0, ji)),
            scratch_shapes=[pltpu.VMEM((wo, tn), jnp.float32)],
        ),
        compiler_params=pltpu.CompilerParams(
            dimension_semantics=("parallel", "parallel", "parallel",
                                 "arbitrary", "arbitrary")),
        cost_estimate=cost,
    )(x, w, scale, bias)

    out = out[..., :cout]                        # drop cout padding (if any)
    return jnp.transpose(out, (0, 3, 1, 2))      # NHWC -> NCHW


# ----------------------------------------------------------------------------
# Parameter init: conv weight + eval-mode BN folded into scale/bias,
# padded / flattened / cast ONCE (not per call).
# ----------------------------------------------------------------------------
def init_conv_params(key, cin, cout, kernel_size, eps=1e-5):
    # TODO(synk): BatchNorm training-mode batch statistics are not implemented;
    # the kernel folds eval-mode running stats into a per-channel scale/bias.
    kw_, kg, kb, km, kv = jax.random.split(key, 5)
    k = kernel_size
    fan_in = cin * k * k
    w = jax.random.normal(kw_, (k, k, cin, cout), jnp.float32) * np.sqrt(1.0 / fan_in)
    gamma = 1.0 + 0.1 * jax.random.normal(kg, (cout,), jnp.float32)
    beta = 0.1 * jax.random.normal(kb, (cout,), jnp.float32)
    running_mean = 0.1 * jax.random.normal(km, (cout,), jnp.float32)
    running_var = 1.0 + 0.1 * jax.random.uniform(kv, (cout,), jnp.float32)
    scale = gamma / jnp.sqrt(running_var + eps)            # BN eval-mode fold
    bias = beta - running_mean * scale

    tk, cin_p = _pick_tile(cin)
    tn, cout_p = _pick_tile(cout)
    w_p = jnp.pad(w, ((0, 0), (0, 0), (0, cin_p - cin),
                      (0, cout_p - cout))).astype(jnp.bfloat16)
    s_p = jnp.pad(scale, (0, cout_p - cout)).reshape(1, cout_p)
    b_p = jnp.pad(bias, (0, cout_p - cout)).reshape(1, cout_p)
    return dict(w=w_p, scale=s_p, bias=b_p, cin=cin, cout=cout, tn=tn, tk=tk)


# ----------------------------------------------------------------------------
# Pure-JAX reference (uses the same bf16-rounded weights/inputs)
# ----------------------------------------------------------------------------
def _reference(x_nchw, params, *, stride, padding):
    cin, cout = params["cin"], params["cout"]
    w = params["w"].astype(jnp.float32)[:, :, :cin, :cout]   # (KH, KW, Cin, Cout)
    w_oihw = jnp.transpose(w, (3, 2, 0, 1))
    y = jax.lax.conv_general_dilated(
        x_nchw, w_oihw, (stride, stride),
        [(padding, padding), (padding, padding)],
        dimension_numbers=("NCHW", "OIHW", "NCHW"),
        precision=jax.lax.Precision.HIGHEST)
    s = params["scale"][0, :cout][None, :, None, None]
    b = params["bias"][0, :cout][None, :, None, None]
    y = y * s + b
    return y * jax.nn.sigmoid(y)


if __name__ == "__main__":
    key = jax.random.PRNGKey(0)
    kx, kp = jax.random.split(key)

    # Conv(in_channels=4, out_channels=32, kernel_size=3, stride=1, padding=1)
    N, CIN, H, W = 2, 4, 16, 16
    COUT, K, STRIDE, PAD = 32, 3, 1, 1

    params = init_conv_params(kp, CIN, COUT, K)
    x = jax.random.normal(kx, (N, CIN, H, W), jnp.float32)
    # Round the input to bf16 once so the pure-JAX reference sees identical inputs.
    x = x.astype(jnp.bfloat16).astype(jnp.float32)

    out = conv_bn_silu(x, params["w"], params["scale"], params["bias"],
                       stride=STRIDE, padding=PAD, cout=COUT,
                       tn=params["tn"], tk=params["tk"])
    out = jax.block_until_ready(out)
    assert out.shape == (N, COUT, H, W), out.shape
    assert out.dtype == jnp.float32

    ref = _reference(x, params, stride=STRIDE, padding=PAD)
    err = float(jnp.max(jnp.abs(out - ref)))
    assert err < 2e-2, f"max abs err vs reference: {err}"
    print("KERNEL_OK")
</pallas_src>

<mosaic_0001>
module attributes {stable_mosaic.version = 11 : i64} {
  func.func @_conv_bn_silu_kernel(%arg0: i32, %arg1: i32, %arg2: i32, %arg3: i32, %arg4: i32, %arg5: memref<1x1x18x8xbf16, #tpu.memory_space<vmem>>, %arg6: memref<1x3x8x32xbf16, #tpu.memory_space<vmem>>, %arg7: memref<1x32xf32, #tpu.memory_space<vmem>>, %arg8: memref<1x32xf32, #tpu.memory_space<vmem>>, %arg9: memref<1x1x16x32xf32, #tpu.memory_space<vmem>>, %arg10: memref<16x32xf32, #tpu.memory_space<vmem>>) attributes {dimension_semantics = [#tpu.dimension_semantics<parallel>, #tpu.dimension_semantics<parallel>, #tpu.dimension_semantics<parallel>, #tpu.dimension_semantics<arbitrary>, #tpu.dimension_semantics<arbitrary>], iteration_bounds = array<i64: 2, 16, 1, 3, 1>, scalar_prefetch = 0 : i64, scratch_operands = 1 : i64, tpu.core_type = #tpu.core_type<tc>, window_params = [{transform_indices = @transform_0, window_bounds = array<i64: 1, 1, 18, 8>}, {transform_indices = @transform_1, window_bounds = array<i64: 1, 3, 8, 32>}, {transform_indices = @transform_2, window_bounds = array<i64: 1, 32>}, {transform_indices = @transform_3, window_bounds = array<i64: 1, 32>}, {transform_indices = @transform_4, window_bounds = array<i64: 1, 1, 16, 32>}]} {
    %c0_i32 = arith.constant 0 : i32
    %0 = arith.cmpi eq, %arg3, %c0_i32 : i32
    %c0_i32_0 = arith.constant 0 : i32
    %1 = arith.cmpi eq, %arg4, %c0_i32_0 : i32
    %2 = arith.andi %0, %1 : i1
    %3 = arith.extui %2 : i1 to i32
    %c0_i32_1 = arith.constant 0 : i32
    %4 = arith.cmpi ne, %3, %c0_i32_1 : i32
    scf.if %4 {
      %cst_31 = arith.constant 0.000000e+00 : f32
      %33 = vector.broadcast %cst_31 : f32 to vector<16x32xf32>
      %c0_32 = arith.constant 0 : index
      %c0_33 = arith.constant 0 : index
      %34 = vector.load %arg10[%c0_32, %c0_33] : memref<16x32xf32, #tpu.memory_space<vmem>>, vector<16x32xf32>
      tpu.vector_store %arg10[%c0_32, %c0_33], %33 {strides = array<i32>} : memref<16x32xf32, #tpu.memory_space<vmem>>, vector<16x32xf32>,
    } else {
    }
    %c0 = arith.constant 0 : index
    %c0_2 = arith.constant 0 : index
    %c0_3 = arith.constant 0 : index
    %c0_4 = arith.constant 0 : index
    %5 = vector.load %arg5[%c0, %c0_2, %c0_3, %c0_4] : memref<1x1x18x8xbf16, #tpu.memory_space<vmem>>, vector<1x1x18x8xbf16>
    %6 = vector.shape_cast %5 : vector<1x1x18x8xbf16> to vector<18x8xbf16>
    %7 = vector.extract_strided_slice %6 {offsets = [0, 0], sizes = [16, 8], strides = [1, 1]} : vector<18x8xbf16> to vector<16x8xbf16>
    %c0_5 = arith.constant 0 : index
    %c0_6 = arith.constant 0 : index
    %8 = vector.load %arg10[%c0_5, %c0_6] : memref<16x32xf32, #tpu.memory_space<vmem>>, vector<16x32xf32>
    %c0_7 = arith.constant 0 : index
    %c0_8 = arith.constant 0 : index
    %c0_9 = arith.constant 0 : index
    %c0_10 = arith.constant 0 : index
    %9 = vector.load %arg6[%c0_7, %c0_8, %c0_9, %c0_10] : memref<1x3x8x32xbf16, #tpu.memory_space<vmem>>, vector<1x1x8x32xbf16>
    %10 = vector.shape_cast %9 : vector<1x1x8x32xbf16> to vector<8x32xbf16>
    %cst = arith.constant dense<0.000000e+00> : vector<16x32xf32>
    %11 = tpu.matmul %7, %10, %cst {dimension_numbers = #tpu.dot_dimension_numbers<[1], [0], [0], [1], [0, 0, 1, 1], [], []>} : vector<16x8xbf16>, vector<8x32xbf16>, vector<16x32xf32> -> vector<16x32xf32>
    %12 = arith.addf %8, %11 : vector<16x32xf32>
    %c0_11 = arith.constant 0 : index
    %c0_12 = arith.constant 0 : index
    %13 = vector.load %arg10[%c0_11, %c0_12] : memref<16x32xf32, #tpu.memory_space<vmem>>, vector<16x32xf32>
    tpu.vector_store %arg10[%c0_11, %c0_12], %12 {strides = array<i32>} : memref<16x32xf32, #tpu.memory_space<vmem>>, vector<16x32xf32>,
    %14 = vector.extract_strided_slice %6 {offsets = [1, 0], sizes = [16, 8], strides = [1, 1]} : vector<18x8xbf16> to vector<16x8xbf16>
    %c0_13 = arith.constant 0 : index
    %c0_14 = arith.constant 0 : index
    %15 = vector.load %arg10[%c0_13, %c0_14] : memref<16x32xf32, #tpu.memory_space<vmem>>, vector<16x32xf32>
    %c0_15 = arith.constant 0 : index
    %c1 = arith.constant 1 : index
    %c0_16 = arith.constant 0 : index
    %c0_17 = arith.constant 0 : index
    %16 = vector.load %arg6[%c0_15, %c1, %c0_16, %c0_17] : memref<1x3x8x32xbf16, #tpu.memory_space<vmem>>, vector<1x1x8x32xbf16>
    %17 = vector.shape_cast %16 : vector<1x1x8x32xbf16> to vector<8x32xbf16>
    %cst_18 = arith.constant dense<0.000000e+00> : vector<16x32xf32>
    %18 = tpu.matmul %14, %17, %cst_18 {dimension_numbers = #tpu.dot_dimension_numbers<[1], [0], [0], [1], [0, 0, 1, 1], [], []>} : vector<16x8xbf16>, vector<8x32xbf16>, vector<16x32xf32> -> vector<16x32xf32>
    %19 = arith.addf %15, %18 : vector<16x32xf32>
    %c0_19 = arith.constant 0 : index
    %c0_20 = arith.constant 0 : index
    %20 = vector.load %arg10[%c0_19, %c0_20] : memref<16x32xf32, #tpu.memory_space<vmem>>, vector<16x32xf32>
    tpu.vector_store %arg10[%c0_19, %c0_20], %19 {strides = array<i32>} : memref<16x32xf32, #tpu.memory_space<vmem>>, vector<16x32xf32>,
    %21 = vector.extract_strided_slice %6 {offsets = [2, 0], sizes = [16, 8], strides = [1, 1]} : vector<18x8xbf16> to vector<16x8xbf16>
    %c0_21 = arith.constant 0 : index
    %c0_22 = arith.constant 0 : index
    %22 = vector.load %arg10[%c0_21, %c0_22] : memref<16x32xf32, #tpu.memory_space<vmem>>, vector<16x32xf32>
    %c0_23 = arith.constant 0 : index
    %c2 = arith.constant 2 : index
    %c0_24 = arith.constant 0 : index
    %c0_25 = arith.constant 0 : index
    %23 = vector.load %arg6[%c0_23, %c2, %c0_24, %c0_25] : memref<1x3x8x32xbf16, #tpu.memory_space<vmem>>, vector<1x1x8x32xbf16>
    %24 = vector.shape_cast %23 : vector<1x1x8x32xbf16> to vector<8x32xbf16>
    %cst_26 = arith.constant dense<0.000000e+00> : vector<16x32xf32>
    %25 = tpu.matmul %21, %24, %cst_26 {dimension_numbers = #tpu.dot_dimension_numbers<[1], [0], [0], [1], [0, 0, 1, 1], [], []>} : vector<16x8xbf16>, vector<8x32xbf16>, vector<16x32xf32> -> vector<16x32xf32>
    %26 = arith.addf %22, %25 : vector<16x32xf32>
    %c0_27 = arith.constant 0 : index
    %c0_28 = arith.constant 0 : index
    %27 = vector.load %arg10[%c0_27, %c0_28] : memref<16x32xf32, #tpu.memory_space<vmem>>, vector<16x32xf32>
    tpu.vector_store %arg10[%c0_27, %c0_28], %26 {strides = array<i32>} : memref<16x32xf32, #tpu.memory_space<vmem>>, vector<16x32xf32>,
    %c2_i32 = arith.constant 2 : i32
    %28 = arith.cmpi eq, %arg3, %c2_i32 : i32
    %c0_i32_29 = arith.constant 0 : i32
    %29 = arith.cmpi eq, %arg4, %c0_i32_29 : i32
    %30 = arith.andi %28, %29 : i1
    %31 = arith.extui %30 : i1 to i32
    %c0_i32_30 = arith.constant 0 : i32
    %32 = arith.cmpi ne, %31, %c0_i32_30 : i32
    scf.if %32 {
      %c0_31 = arith.constant 0 : index
      %c0_32 = arith.constant 0 : index
      %33 = vector.load %arg10[%c0_31, %c0_32] : memref<16x32xf32, #tpu.memory_space<vmem>>, vector<16x32xf32>
      %c0_33 = arith.constant 0 : index
      %c0_34 = arith.constant 0 : index
      %34 = vector.load %arg7[%c0_33, %c0_34] : memref<1x32xf32, #tpu.memory_space<vmem>>, vector<1x32xf32>
      %35 = vector.broadcast %34 : vector<1x32xf32> to vector<16x32xf32>
      %36 = arith.mulf %33, %35 : vector<16x32xf32>
      %c0_35 = arith.constant 0 : index
      %c0_36 = arith.constant 0 : index
      %37 = vector.load %arg8[%c0_35, %c0_36] : memref<1x32xf32, #tpu.memory_space<vmem>>, vector<1x32xf32>
      %38 = vector.broadcast %37 : vector<1x32xf32> to vector<16x32xf32>
      %39 = arith.addf %36, %38 : vector<16x32xf32>
      %cst_37 = arith.constant 0.000000e+00 : f32
      %40 = vector.broadcast %cst_37 : f32 to vector<16x32xf32>
      %41 = arith.subf %40, %39 : vector<16x32xf32>
      %42 = math.exp %41 : vector<16x32xf32>
      %cst_38 = arith.constant 1.000000e+00 : f32
      %43 = vector.broadcast %cst_38 : f32 to vector<16x32xf32>
      %44 = arith.addf %43, %42 : vector<16x32xf32>
      %45 = tpu.reciprocal %44 {approx = true} : vector<16x32xf32> -> vector<16x32xf32>
      %46 = arith.mulf %39, %45 : vector<16x32xf32>
      %c0_39 = arith.constant 0 : index
      %c0_40 = arith.constant 0 : index
      %c0_41 = arith.constant 0 : index
      %c0_42 = arith.constant 0 : index
      %47 = vector.load %arg9[%c0_39, %c0_40, %c0_41, %c0_42] : memref<1x1x16x32xf32, #tpu.memory_space<vmem>>, vector<1x1x16x32xf32>
      %48 = vector.shape_cast %47 : vector<1x1x16x32xf32> to vector<16x32xf32>
      %49 = vector.shape_cast %46 : vector<16x32xf32> to vector<1x1x16x32xf32>
      tpu.vector_store %arg9[%c0_39, %c0_40, %c0_41, %c0_42], %49 {strides = array<i32>} : memref<1x1x16x32xf32, #tpu.memory_space<vmem>>, vector<1x1x16x32xf32>,
    } else {
    }
    return
  }
  func.func @transform_0(%arg0: i32, %arg1: i32, %arg2: i32, %arg3: i32, %arg4: i32) -> (i32, i32, i32, i32) {
    %c1_i32 = arith.constant 1 : i32
    %0 = arith.muli %arg1, %c1_i32 : i32
    %1 = arith.addi %0, %arg3 : i32
    %c0_i32 = arith.constant 0 : i32
    %c0_i32_0 = arith.constant 0 : i32
    return %arg0, %1, %c0_i32, %arg4 : i32, i32, i32, i32
  }
  func.func @transform_1(%arg0: i32, %arg1: i32, %arg2: i32, %arg3: i32, %arg4: i32) -> (i32, i32, i32, i32) {
    %c0_i32 = arith.constant 0 : i32
    %c0_i32_0 = arith.constant 0 : i32
    return %arg3, %c0_i32, %arg4, %arg2 : i32, i32, i32, i32
  }
  func.func @transform_2(%arg0: i32, %arg1: i32, %arg2: i32, %arg3: i32, %arg4: i32) -> (i32, i32) {
    %c0_i32 = arith.constant 0 : i32
    %c0_i32_0 = arith.constant 0 : i32
    return %c0_i32, %arg2 : i32, i32
  }
  func.func @transform_3(%arg0: i32, %arg1: i32, %arg2: i32, %arg3: i32, %arg4: i32) -> (i32, i32) {
    %c0_i32 = arith.constant 0 : i32
    %c0_i32_0 = arith.constant 0 : i32
    return %c0_i32, %arg2 : i32, i32
  }
  func.func @transform_4(%arg0: i32, %arg1: i32, %arg2: i32, %arg3: i32, %arg4: i32) -> (i32, i32, i32, i32) {
    %c0_i32 = arith.constant 0 : i32
    %c0_i32_0 = arith.constant 0 : i32
    return %arg0, %arg1, %c0_i32, %arg2 : i32, i32, i32, i32
  }
}

</mosaic_0001>

<bundles_post_ra>
// kernel: conv_bn_silu.1
= control target key start
LH: loop header
LB: loop body
LE: loop exit
PB: predicated region body
PF: predicated region fallthrough
CT: control target
= control target key end

     0   :  { %9 = vsyncpa [#allocation4], 0  ;;  %s1243_s0 = inlined_call_operand.vmem [shape: bf16[2,18,18,8], index: 0, kind: input, shape index: {}]   ;;  %s1244_s1 = inlined_call_operand.vmem [shape: bf16[3,3,8,32], index: 1, kind: input, shape index: {}]   ;;  %s1245_s2 = inlined_call_operand.vmem [shape: f32[1,32], index: 2, kind: input, shape index: {}]   ;;  %s1246_s3 = inlined_call_operand.vmem [shape: f32[1,32], index: 3, kind: input, shape index: {}]   ;;  %s1247_s4 = inlined_call_operand.hbm [shape: f32[2,16,16,32], index: 4, kind: output, shape index: {}]  }
   0x1   :  { %11 = vsyncpa [#allocation4 + $0x1], 0  ;;  %s1042_s15 = smov 0   ;;  %s1044_s16 = smov 0  }
   0x2   :  { %s1046_s17 = smov 0   ;;  %s1048_s18 = smov 0  }
   0x3   :  { %s1050_s19 = smov 0   ;;  %s1052_s20 = smov 0  }
   0x4   :  { %s1054_s21 = smov 0   ;;  %s1056_s22 = smov 0  }
   0x5   :  { %s1058_s23 = smov 0   ;;  %s1060_s24 = smov 0  }
   0x6 LB: > { %1254 = sst [smem:[#allocation6_spill]] %s997_s21  ;;  %s741_s25 = sadd.s32 4294967295, %s1009_s24   ;;  %s1009_s24 = sphi %s1060_s24, %s17_s24   ;;  %s1005_s23 = sphi %s1058_s23, %s1268_s23   ;;  %s1001_s22 = sphi %s1056_s22, %s1267_s22   ;;  %s997_s21 = sphi %s1054_s21, %s1266_s21   ;;  %s993_s20 = sphi %s1052_s20, %s1265_s20   ;;  %s989_s19 = sphi %s1050_s19, %s1264_s19   ;;  %s985_s18 = sphi %s1048_s18, %s1263_s18   ;;  %s981_s17 = sphi %s1046_s17, %s1271_s17   ;;  %s977_s16 = sphi %s1044_s16, %s1270_s16   ;;  %s973_s15 = sphi %s1042_s15, %s1269_s15  }
   0x7   : > { %1255 = sst [smem:[#allocation7_spill]] %s1001_s22  ;;  %s742_s26 = sadd.s32 4294967294, %s1009_s24  }
   0x8   : > { %1256 = sst [smem:[#allocation8_spill]] %s1005_s23  ;;  %s38_s27 = sadd.s32 1, %s997_s21 }
   0x9   : > { %p40_p0 = scmp.ge.s32.totalorder %s38_s27, 3  ;;  %s46_s28 = sadd.s32 1, %s1001_s22 }
   0xa   : > { %s50_s29 = sadd.s32 1, %s1005_s23  ;;  %p185_p1 = scmp.ne.s32.totalorder %s981_s17, %s977_s16 }
   0xb   : > { %s1273_s27 = smov (%p40_p0, %s38_s27), 0  ;;  %s1275_s28 = smov (!%p40_p0, %s46_s28), %s1001_s22 }
   0xc   : > { %1257 = sst [smem:[#allocation9_spill]] %s1273_s27  ;;  %p186_p2 = scmp.eq.s32.totalorder %s741_s25, 95 }
   0xd   : > { %p191_p3 = scmp.ne.s32.totalorder %s977_s16, %s973_s15  ;;  %p48_p4 = scmp.ge.s32.totalorder %s1275_s28, 16 }
   0xe   : > { %p192_p5 = scmp.eq.s32.totalorder %s742_s26, 95  ;;  %p1104_p6 = por %p186_p2, %p185_p1 }
   0xf   : > { %s1277_s28 = smov (%p48_p4, %s1275_s28), 0  ;;  %s1279_s29 = smov (!%p48_p4, %s50_s29), %s1005_s23 }
  0x10   : > { %1259 = sst [smem:[#allocation10_spill]] %s1277_s28  ;;  %p1111_p7 = por %p192_p5, %p191_p3 }
  0x11   : > { %p747_p8 = scmp.ge.s32.totalorder %s1009_s24, 1  ;;  %p52_p9 = scmp.ge.s32.totalorder %s1279_s29, 2 }
  0x12   : > { %p253_p10 = scmp.lt.s32.totalorder %s1009_s24, 97  ;;  %s169_s6 = ssub.s32 %s1001_s22, %s1277_s28 }
  0x13   : > { %s1281_s29 = smov (%p52_p9, %s1279_s29), 0  ;;  %s175_s9 = sadd.s32 1, %s981_s17 }
  0x14   : > { %1261 = sst [smem:[#allocation11_spill]] %s1281_s29  ;;  %p254_p11 = pnand %p747_p8, %p253_p10 }
  0x15   : > { %s168_s7 = ssub.s32 %s1005_s23, %s1281_s29  ;;  %s1252_s11 = sand.u32 (!%p254_p11), 1, %s977_s16  }
  0x16   : > { %s170_s8 = sor.u32 %s169_s6, %s168_s7  ;;  %257 = sbr.rel (%p254_p11) target bundleno = 352 (0x160), region = 36 }
  0x17   : > { %p173_p12 = scmp.eq.s32.totalorder %s170_s8, 0  ;;  %s304_s12 = sadd.s32 (!%p254_p11), %s985_s18, %s989_s19 }
  0x18   : > { %s748_s13 = sshll.u32 (!%p254_p11), %s1252_s11, 4  ;;  %p305_p13 = scmp.lt.s32.totalorder (!%p254_p11), %s993_s20, 1 }
  0x19   : > { %s1125_s10 = scalar_select %p173_p12, %s981_s17, %s175_s9  }
  0x1a   : > { %p307_p0 = scmp.lt.s32.totalorder (!%p254_p11), %s304_s12, 17  ;;  %p318_p1 = scmp.lt.s32.totalorder (!%p254_p11), %s985_s18, 2 }
  0x1b   : > { %p336_p2 = scmp.eq.s32.totalorder (!%p254_p11), %s985_s18, 0  ;;  %s1143_s21 = scalar_lea.vmem (!%p254_p11), [#allocation3], %s748_s13 }
  0x1d   : > { %s306_s14 = scalar_select %p305_p13, %s993_s20, 1 }
  0x1e   : > { %s1283_s12 = smov (!%p307_p0, %s304_s12), 17  ;;  %vm342_vm0 = vcmask (%p336_p2), 261120   ;;  %v1011_v0 = vmov (%p336_p2), 0.0  }
  0x1f   : > { %s795_s25 = smul.u32 54, %s306_s14  ;;  %343 = vst.msk [vmem:[#allocation2] sm:$0xff] (%p336_p2), %vm342_vm0, %v1011_v0  ;;  %344 = vst.msk [vmem:[#allocation2 + $0x8] sm:$0xff] (%p336_p2), %vm342_vm0, %v1011_v0 }
  0x20   : > { %s794_s26 = smul.u32 3, %s1283_s12 }
  0x21   : > { %s319_s6 = scalar_select %p318_p1, %s985_s18, 2 }
  0x22   : > { %s314_s7 = sadd.s32 %s795_s25, %s794_s26  ;;  %341 = sbr.rel (!%p336_p2) target bundleno = 41 (0x29), region = 40 }
  0x23   : > { %s749_s8 = sshll.u32 %s314_s7, 2  ;;  %s796_s9 = smul.u32 12, %s319_s6 }
  0x24   : > { %s316_s27 = scalar_lea.vmem %s1243_s0, %s749_s8 }
  0x25   : > { %s328_s11 = scalar_lea.vmem %s1244_s1, %s796_s9 }
  0x29 PF: > { %v350_v1 = vld [vmem:[%s328_s11] sm:$0xf]  ;;  %vm360_vm1 = vcmask 1043456   ;;  %v1012_v3 = vmov 0.0   ;;  %vm1013_vm2 = vmmov 0   ;;  %vm356_vm3 = vcmask 64512  }
  0x2a   : > { %v889_v2 = vld [vmem:[%s316_s27] sm:$0xff]   ;;  %776 = vmatprep.subr.bf16.mxu0 %v1012_v3  ;;  %v362_v4 = vsel %vm360_vm1, %v350_v1, 0  ;;  %778 = vmatprep.mubr.msk.bf16.mxu0 %vm1013_vm2, %v1012_v3  ;;  %v890_v7 = vld [vmem:[%s316_s27 + $0x8] ss:$0 sps:$4 sm:$0x11]   ;;  %vm484_vm5 = vcmask 1046528  }
  0x2b   : > { %777 = vmatpush3.bf16.msra.mxu0 %v362_v4  ;;  %782 = vmatprep.subr.bf16.mxu1 %v1012_v3  ;;  %v754_v5 = vld [vmem:[%s328_s11 + $0x4] sm:$0xf]  ;;  %v418_v8 = vshrl.u32 %v889_v2, 16  ;;  %v420_v9 = vshll.u32 %v889_v2, 16  ;;  %v757_v10 = vld [vmem:[%s328_s11 + $0x8] sm:$0xf] }
  0x2c   : > { %v433_v6 = vsel %vm360_vm1, %v754_v5, 0  ;;  %784 = vmatprep.mubr.msk.bf16.mxu1 %vm1013_vm2, %v1012_v3  ;;  %788 = vmatprep.subr.bf16.mxu0 %v1012_v3  ;;  %v425_v12 = vshll.u32 %v890_v7, 16  ;;  %v492_v13 = vsel %vm360_vm1, %v757_v10, 0  ;;  %vm417_vm4 = vsmask.f32 7424  ;;  %p539_p3 = scmp.eq.s32.totalorder %s985_s18, 2 }
  0x2d   : > { %783 = vmatpush3.bf16.msra.mxu1 %v433_v6  ;;  %v422_v11 = vrot.slane %v420_v9, 1  ;;  %v485_v14 = vrot.slane %v889_v2, 1  ;;  %v486_v15 = vrot.slane %v890_v7, 1  ;;  %v348_v20 = vld [vmem:[#allocation2] sm:$0xff]  ;;  %vm407_vm6 = vcmask 261120   ;;  %v349_v22 = vld [vmem:[#allocation2 + $0x8] sm:$0xff] }
  0x2e   : > { %779 = vmatmul.mubr.msk.bf16.vlgmr.msra.gmra.mrb[0].mxu0 %vm356_vm3, %v889_v2  ;;  %v427_v17 = vrot.slane %v425_v12, 1  ;;  %v760_v45 = vld [vmem:[%s1245_s2] ss:$0 sm:$0xff] (%p539_p3) }
  0x2f   : > { %789 = vmatpush3.bf16.msra.mxu0 %v492_v13  ;;  %790 = vmatprep.mubr.msk.bf16.mxu0 %vm1013_vm2, %v1012_v3  ;;  %v423_v16 = vor.u32 %v422_v11, %v418_v8  ;;  %v487_v19 = vsel %vm484_vm5, %v485_v14, %v486_v15  ;;  %v761_v46 = vld [vmem:[%s1246_s3] ss:$0 sm:$0xff] (%p539_p3) }
  0x31   : > { %v428_v18 = vsel %vm417_vm4, %v423_v16, %v427_v17 }
  0x32   : > { %785 = vmatmul.mubr.msk.bf16.vlgmr.msra.gmra.mrb[0].mxu1 %vm356_vm3, %v428_v18 }
  0x36   : > { %791 = vmatmul.mubr.msk.bf16.vlgmr.msra.gmra.mrb[4].mxu0 %vm356_vm3, %v487_v19 }
 0x101   : > { %v398_v21 = vpop.f32.mrb[0].mxu0 }
 0x102   : > { %v405_v23 = vadd.f32 %v398_v21, %v348_v20  ;;  %v780_v24 = vpop.f32.mrb[1].mxu0 }
 0x103   : > { %v401_v25 = vpop.f32.mrb[2].mxu0 }
 0x104   : > { %408 = vst.msk [vmem:[#allocation2] sm:$0xff] %vm407_vm6, %v405_v23  ;;  %v406_v26 = vadd.f32 %v401_v25, %v349_v22  ;;  %v781_v27 = vpop.f32.mrb[3].mxu0 }
 0x105   : > { %v469_v28 = vpop.f32.mrb[0].mxu1 }
 0x106   : > { %409 = vst.msk [vmem:[#allocation2 + $0x8] sm:$0xff] %vm407_vm6, %v406_v26  ;;  %v786_v29 = vpop.f32.mrb[1].mxu1 }
 0x107   : > { %v472_v30 = vpop.f32.mrb[2].mxu1 }
 0x108   : > { %v787_v31 = vpop.f32.mrb[3].mxu1 }
 0x109   : > { %v528_v32 = vpop.f32.mrb[4].mxu0 }
 0x10a   : > { %v792_v33 = vpop.f32.mrb[5].mxu0 }
 0x10b   : > { %v410_v34 = vld [vmem:[#allocation2] sm:$0xff]  ;;  %v531_v35 = vpop.f32.mrb[6].mxu0 }
 0x10c   : > { %v476_v36 = vadd.f32 %v469_v28, %v410_v34  ;;  %v793_v37 = vpop.f32.mrb[7].mxu0 }
 0x10d   : > { %v411_v38 = vld [vmem:[#allocation2 + $0x8] sm:$0xff] }
 0x10e   : > { %478 = vst.msk [vmem:[#allocation2] sm:$0xff] %vm407_vm6, %v476_v36  ;;  %v477_v39 = vadd.f32 %v472_v30, %v411_v38 }
 0x110   : > { %479 = vst.msk [vmem:[#allocation2 + $0x8] sm:$0xff] %vm407_vm6, %v477_v39 }
 0x114   : > { %543 = sbr.rel (!%p539_p3) target bundleno = 325 (0x145), region = 44 }
 0x115   : > { %v480_v40 = vld [vmem:[#allocation2] sm:$0xff] }
 0x116   : > { %v535_v41 = vadd.f32 %v528_v32, %v480_v40 }
 0x117   : > { %v481_v42 = vld [vmem:[#allocation2 + $0x8] sm:$0xff] }
 0x118   : > { %537 = vst.msk [vmem:[#allocation2] sm:$0xff] %vm407_vm6, %v535_v41  ;;  %v536_v43 = vadd.f32 %v531_v35, %v481_v42 }
 0x11a   : > { %538 = vst.msk [vmem:[#allocation2 + $0x8] sm:$0xff] %vm407_vm6, %v536_v43 }
 0x11f   : > { %v544_v44 = vld [vmem:[#allocation2] sm:$0xff] }
 0x120   : > { %v553_v47 = vmul.f32 %v760_v45, %v544_v44 }
 0x121   : > { %v545_v48 = vld [vmem:[#allocation2 + $0x8] sm:$0xff] }
 0x122   : > { %v554_v49 = vmul.f32 %v760_v45, %v545_v48  ;;  %v562_v50 = vadd.f32 %v761_v46, %v553_v47 }
 0x124   : > { %v563_v51 = vadd.f32 %v761_v46, %v554_v49  ;;  %v564_v52 = vsub.f32 0.0, %v562_v50 }
 0x126   : > { %v565_v53 = vsub.f32 0.0, %v563_v51  ;;  %v566_v54 = vmul.f32 1.442695, %v564_v52 }
 0x128   : > { %v568_v55 = vmul.f32 1.442695, %v565_v53  ;;  %891 = vpow2.f32 %v566_v54 }
 0x12a   : > { %893 = vpow2.f32 %v568_v55 }
 0x132   : > { %v892_v56 = vpop.eup %891 }
 0x133   : > { %v570_v58 = vadd.f32 1.0, %v892_v56 }
 0x134   : > { %v894_v57 = vpop.eup %893 }
 0x135   : > { %v571_v59 = vadd.f32 1.0, %v894_v57  ;;  %895 = vrcp.f32 %v570_v58 }
 0x137   : > { %897 = vrcp.f32 %v571_v59 }
 0x13f   : > { %v896_v60 = vpop.eup %895 }
 0x140   : > { %v574_v62 = vmul.f32 %v896_v60, %v562_v50 }
 0x141   : > { %v898_v61 = vpop.eup %897 }
 0x142   : > { %v575_v63 = vmul.f32 %v898_v61, %v563_v51  ;;  %576 = vst.msk [vmem:[%s1143_s21] sm:$0xff] %vm407_vm6, %v574_v62 }
 0x144   : > { %577 = vst.msk [vmem:[%s1143_s21 + $0x8] sm:$0xff] %vm407_vm6, %v575_v63 }
 0x145 PF: > { %s763_s18 = sshll.u32 %s989_s19, 1  ;;  %s764_s29 = sshll.u32 %s993_s20, 5 }
 0x146   : > { %s595_s11 = sshll.u32 %s1143_s21, 4  ;;  %s592_s12 = sadd.s32 %s764_s29, %s763_s18  ;;  %s1176_s11 = int_to_ptr.vmem [resolvable:$true] %s595_s11 }
 0x147   : > { %s765_s13 = sshll.u32 %s592_s12, 7  ;;  %s1262_s6 = sand.u32 1, %s977_s16  }
 0x148   : > { %s1181_s26 = scalar_lea.hbm %s1247_s4, %s765_s13  ;;  %s1185_s7 = scalar_lea.sflag [#allocation4], %s1262_s6 }
 0x149   : > { %s899_s8 = scalar_lea.vmem %s1176_s11, 256  ;;  %s1014_s19 = smov [#allocation3]  }
 0x14a   : > { %p900_p4 = scmp.ne.s32.totalorder %s1176_s11, %s899_s8  ;;  %s903_s20 = sshll.u32 %s1014_s19, 4  ;;  %s904_s20 = int_to_ptr.vmem [resolvable:$false] %s903_s20 }
 0x14b   : > { %s905_s21 = scalar_lea.vmem %s904_s20, 512  ;;  %p906_p9 = scmp.lt.s32.totalorder %s1176_s11, %s904_s20 }
 0x14c   : > { %p901_p5 = pnand %p900_p4, %p1104_p6  ;;  %p907_p10 = scmp.lt.s32.totalorder %s905_s21, %s899_s8 }
 0x14e   : > { %p902_p8 = pneg %p901_p5  ;;  %p908_p11 = por %p907_p10, %p906_p9 }
 0x150   : > { %p909_p12 = pnand %p908_p11, %p902_p8 }
 0x152   : > { %912 = shalt.err (!%p909_p12)
}
 0x153   : > { %s913_s9 = scalar_lea.hbm %s1181_s26, 256  ;;  %s917_s27 = scalar_lea.hbm %s1247_s4, 8192 }
 0x154   : > { %p914_p13 = scmp.ne.s32.totalorder %s1181_s26, %s913_s9  ;;  %p918_p2 = scmp.lt.u32.totalorder %s1181_s26, %s1247_s4 }
 0x155   : > { %p919_p3 = scmp.lt.u32.totalorder %s917_s27, %s913_s9  ;;  %p921_p5 = scmp.lt.u32.totalorder %s913_s9, %s1181_s26 }
 0x156   : > { %p915_p0 = pnand %p914_p13, %p1104_p6 }
 0x157   : > { %p920_p4 = por %p919_p3, %p918_p2 }
 0x158   : > { %p916_p1 = pneg %p915_p0 }
 0x159   : > { %p922_p8 = por %p921_p5, %p920_p4 }
 0x15b   : > { %p923_p9 = pnand %p922_p8, %p916_p1 }
 0x15d   : > { %926 = shalt.err (!%p923_p9)
}
 0x15e   : > { %s1015_s29 = smov 128   ;;  %s1016_s12 = smov 8  }
 0x15f   : > { %797 = dma.vmem_to_hbm [thread:$0]  (%p1104_p6), %s1176_s11, 256, %s1181_s26, %s1185_s7, %s1015_s29, %s1015_s29, %s1016_s12  }
 0x160 PF: > { %p803_p10 = scmp.ge.s32.totalorder %s1009_s24, 2  ;;  %s610_s13 = sand.u32 1, %s973_s15  }
 0x161   : > { %s611_s14 = scalar_lea.sflag [#allocation4], %s610_s13 }
 0x162   : > { %p800_p11 = pnand %p803_p10, %p1111_p7 }
 0x164   : > { %968 = dma.done.wait (!%p800_p11), %s611_s14, 256  }
 0x165   : > { %970 = vsyncadd (!%p800_p11), %s611_s14, 4294967040  ;;  %s17_s24 = sadd.s32 1, %s1009_s24   ;;  %s1263_s18 = sld [smem:[#allocation6_spill]] }
 0x166   : > { %p14_p12 = scmp.ge.s32.totalorder %s17_s24, 98   ;;  %s1264_s19 = sld [smem:[#allocation7_spill]] }
 0x167   : > { %s1265_s20 = sld [smem:[#allocation8_spill]]  ;;  %s1266_s21 = sld [smem:[#allocation9_spill]] }
 0x168   : > { %s1267_s22 = sld [smem:[#allocation10_spill]]  ;;  %s1268_s23 = sld [smem:[#allocation11_spill]] }
 0x169   : > { %s1269_s15 = smov %s977_s16  ;;  %s1270_s16 = smov %s981_s17 }
 0x16a   : > { %s1271_s17 = smov %s1125_s10  ;;  %16 = sbr.rel (!%p14_p12) target bundleno = 6 (0x6), region = 90 }
 0x171   :  { %616 = vsyncpa [#allocation4], 1 }
 0x172   :  { %618 = vsyncpa [#allocation4 + $0x1], 1 }

</bundles_post_ra>
